<compile_context>
chip_gen: v7x
topology: tpu7x:2x2x1
jax: 0.10.0
libtpu: 0.0.40
codegen_flags: <defaults>
</compile_context>

<pallas_src>
import functools

import jax
import jax.numpy as jnp
from jax.experimental import pallas as pl
from jax.experimental.pallas import tpu as pltpu

_LANE = 128          # TPU lane width; each head gets its own 128-lane group
_NEG_BIG = -1e30     # bias for padded advantage columns (never wins the max)


def _round_up(n, m):
    return ((n + m - 1) // m) * m


def _cdiv(a, b):
    return (a + b - 1) // b


def _qnet_kernel(action_dim,
                 x_ref, w1_ref, b1_ref, w2_ref, b2_ref,
                 wh1_ref, bh1_ref, wh2_ref, bh2_ref,
                 out_ref):
    f32 = jnp.float32
    bf16 = jnp.bfloat16

    x = x_ref[...].astype(bf16)

    # trunk: Linear(state_dim, 256) + ReLU ; Linear(256, 128) + ReLU
    h1 = jnp.maximum(
        jnp.dot(x, w1_ref[...], preferred_element_type=f32) + b1_ref[...], 0.0)
    enc = jnp.maximum(
        jnp.dot(h1.astype(bf16), w2_ref[...], preferred_element_type=f32)
        + b2_ref[...], 0.0)

    # fused first layers of all action heads + value head: (B, (A+1)*64)
    heads = jnp.maximum(
        jnp.dot(enc.astype(bf16), wh1_ref[...], preferred_element_type=f32)
        + bh1_ref[...], 0.0)

    # fused block-diagonal, lane-padded second layers: (B, (A+1)*128)
    #   cols [a*128, a*128+scale)      : advantages of head a (rest bias=-1e30)
    #   cols [A*128, (A+1)*128)        : value, replicated across all 128 lanes
    slab = jnp.dot(heads.astype(bf16), wh2_ref[...],
                   preferred_element_type=f32) + bh2_ref[...]

    value = slab[:, action_dim * _LANE:(action_dim + 1) * _LANE]  # replicated
    for a in range(action_dim):
        adv = slab[:, a * _LANE:(a + 1) * _LANE]          # aligned 128-lane view
        m = jnp.max(adv, axis=-1, keepdims=True)          # padded cols = -1e30
        out_ref[a, :, :] = (adv - m + value).astype(out_ref.dtype)


def pack_qnet_params(params, *, action_dim, action_scale):
    """Pack per-head weights into fused / block-diagonal bf16 matrices (done once)."""
    (w1, b1, w2, b2, wa1, ba1, wa2, ba2, wv1, bv1, wv2, bv2) = params
    assert action_scale <= _LANE, "per-head 128-lane packing assumes action_scale <= 128"
    enc_dim = wa1.shape[1]      # 128
    hid = wa1.shape[2]          # 64

    # fused first head layers + value first layer: (enc_dim, (A+1)*hid)
    wh1 = jnp.concatenate(
        [jnp.transpose(wa1, (1, 0, 2)).reshape(enc_dim, action_dim * hid), wv1],
        axis=1)
    bh1 = jnp.concatenate([ba1.reshape(1, action_dim * hid), bv1], axis=1)

    # block-diagonal, lane-padded second layers: ((A+1)*hid, (A+1)*128)
    n_in = (action_dim + 1) * hid
    n_out = (action_dim + 1) * _LANE
    wh2 = jnp.zeros((n_in, n_out), jnp.float32)
    bh2 = jnp.full((1, n_out), _NEG_BIG, jnp.float32)
    for a in range(action_dim):
        wh2 = wh2.at[a * hid:(a + 1) * hid,
                     a * _LANE:a * _LANE + action_scale].set(wa2[a])
        bh2 = bh2.at[:, a * _LANE:a * _LANE + action_scale].set(
            ba2[a].reshape(1, action_scale))
    # value replicated across its whole 128-lane group (saves a lane broadcast)
    wh2 = wh2.at[action_dim * hid:, action_dim * _LANE:].set(jnp.tile(wv2, (1, _LANE)))
    bh2 = bh2.at[:, action_dim * _LANE:].set(jnp.tile(bv2, (1, _LANE)))

    # bf16 weights (halves HBM weight traffic, native MXU dtype); f32 biases.
    bf = lambda w: w.astype(jnp.bfloat16)
    return (bf(w1), b1, bf(w2), b2, bf(wh1), bh1, bf(wh2), bh2)


def qnetwork_forward(x, packed_params, *, action_dim, action_scale,
                     max_tile_b=512):
    """Full QNetwork forward in one Pallas kernel. Returns (action_dim, B, action_scale)."""
    (w1, b1, w2, b2, wh1, bh1, wh2, bh2) = packed_params
    B, state_dim = x.shape

    # Only pad when B is not sublane-aligned (rare for real batches).
    B8 = _round_up(max(B, 1), 8)
    if B8 != B:
        x = jnp.pad(x, ((0, B8 - B), (0, 0)))

    # Tile selection: big tiles amortize the ~0.35us/step overhead, but keep
    # >=2 grid steps for moderately large batches so both v7x TCs get work.
    if B8 > 2 * max_tile_b:
        tile_b = max_tile_b
    elif B8 >= 64:
        tile_b = _round_up(_cdiv(B8, 2), 8)
    else:
        tile_b = B8
    grid_b = _cdiv(B8, tile_b)

    args = (x, w1, b1, w2, b2, wh1, bh1, wh2, bh2)

    def weight_spec(arr):
        nd = arr.ndim
        return pl.BlockSpec(arr.shape, lambda i, _nd=nd: (0,) * _nd)

    in_specs = ([pl.BlockSpec((tile_b, state_dim), lambda i: (i, 0))]
                + [weight_spec(a) for a in args[1:]])
    out_spec = pl.BlockSpec((action_dim, tile_b, _LANE), lambda i: (0, i, 0))

    kernel = functools.partial(_qnet_kernel, action_dim)

    out = pl.pallas_call(
        kernel,
        out_shape=jax.ShapeDtypeStruct((action_dim, B8, _LANE), jnp.float32),
        grid_spec=pltpu.PrefetchScalarGridSpec(
            num_scalar_prefetch=0,
            grid=(grid_b,),
            in_specs=in_specs,
            out_specs=out_spec,
        ),
        compiler_params=pltpu.CompilerParams(
            dimension_semantics=("parallel",)),
    )(*args)

    # (A, B8, 128) -> (A, B, action_scale): already PyTorch's stacked layout,
    # no transpose pass needed.
    return out[:, :B, :action_scale]


def init_params(key, state_dim, action_dim, action_scale):
    """Deterministic init mimicking PyTorch nn.Linear default (U[-1/sqrt(fan_in), ...])."""
    def linear(key, fan_in, fan_out):
        kw, kb = jax.random.split(key)
        bound = 1.0 / jnp.sqrt(fan_in)
        w = jax.random.uniform(kw, (fan_in, fan_out), jnp.float32, -bound, bound)
        b = jax.random.uniform(kb, (1, fan_out), jnp.float32, -bound, bound)
        return w, b

    keys = jax.random.split(key, 4 + 2 * action_dim)
    w1, b1 = linear(keys[0], state_dim, 256)
    w2, b2 = linear(keys[1], 256, 128)
    wv1, bv1 = linear(keys[2], 128, 64)
    wv2, bv2 = linear(keys[3], 64, 1)

    wa1_list, ba1_list, wa2_list, ba2_list = [], [], [], []
    for a in range(action_dim):
        wa1_a, ba1_a = linear(keys[4 + 2 * a], 128, 64)
        wa2_a, ba2_a = linear(keys[5 + 2 * a], 64, action_scale)
        wa1_list.append(wa1_a)
        ba1_list.append(ba1_a)
        wa2_list.append(wa2_a)
        ba2_list.append(ba2_a)

    wa1 = jnp.stack(wa1_list)   # (action_dim, 128, 64)
    ba1 = jnp.stack(ba1_list)   # (action_dim, 1, 64)
    wa2 = jnp.stack(wa2_list)   # (action_dim, 64, action_scale)
    ba2 = jnp.stack(ba2_list)   # (action_dim, 1, action_scale)

    return (w1, b1, w2, b2, wa1, ba1, wa2, ba2, wv1, bv1, wv2, bv2)


def qnetwork_reference(x, params, *, action_dim):
    """Pure-JAX f32 reference (mirrors the PyTorch forward) for correctness checking."""
    (w1, b1, w2, b2, wa1, ba1, wa2, ba2, wv1, bv1, wv2, bv2) = params
    h1 = jax.nn.relu(x @ w1 + b1)
    enc = jax.nn.relu(h1 @ w2 + b2)
    value = jax.nn.relu(enc @ wv1 + bv1) @ wv2 + bv2
    outs = []
    for a in range(action_dim):
        ah = jax.nn.relu(enc @ wa1[a] + ba1[a])
        adv = ah @ wa2[a] + ba2[a]
        adv = adv - jnp.max(adv, axis=-1, keepdims=True)
        outs.append(adv + value)
    return jnp.stack(outs)


if __name__ == "__main__":
    state_dim = 16
    action_dim = 3
    action_scale = 6
    batch = 4

    key = jax.random.PRNGKey(0)
    k_params, k_x = jax.random.split(key)
    params = init_params(k_params, state_dim, action_dim, action_scale)
    packed = pack_qnet_params(params, action_dim=action_dim,
                              action_scale=action_scale)
    x = jax.random.normal(k_x, (batch, state_dim), jnp.float32)

    out = qnetwork_forward(x, packed, action_dim=action_dim,
                           action_scale=action_scale)
    out = jax.block_until_ready(out)

    ref = qnetwork_reference(x, params, action_dim=action_dim)
    assert out.shape == (action_dim, batch, action_scale)
    # Kernel uses bf16 weights/activations on the MXU (f32 accumulation);
    # compare against the f32 reference with bf16-appropriate tolerance.
    assert jnp.allclose(out, ref, atol=5e-2, rtol=5e-2), "mismatch vs reference"

    print("KERNEL_OK")
</pallas_src>

<mosaic_0001>
module attributes {stable_mosaic.version = 11 : i64} {
  func.func @_qnet_kernel(%arg0: i32, %arg1: memref<8x16xf32, #tpu.memory_space<vmem>>, %arg2: memref<16x256xbf16, #tpu.memory_space<vmem>>, %arg3: memref<1x256xf32, #tpu.memory_space<vmem>>, %arg4: memref<256x128xbf16, #tpu.memory_space<vmem>>, %arg5: memref<1x128xf32, #tpu.memory_space<vmem>>, %arg6: memref<128x256xbf16, #tpu.memory_space<vmem>>, %arg7: memref<1x256xf32, #tpu.memory_space<vmem>>, %arg8: memref<256x512xbf16, #tpu.memory_space<vmem>>, %arg9: memref<1x512xf32, #tpu.memory_space<vmem>>, %arg10: memref<3x8x128xf32, #tpu.memory_space<vmem>>) attributes {dimension_semantics = [#tpu.dimension_semantics<parallel>], iteration_bounds = array<i64: 1>, scalar_prefetch = 0 : i64, scratch_operands = 0 : i64, tpu.core_type = #tpu.core_type<tc>, window_params = [{transform_indices = @transform_0, window_bounds = array<i64: 8, 16>}, {pipeline_mode = #tpu.pipeline_mode<synchronous>, transform_indices = @transform_1, window_bounds = array<i64: 16, 256>}, {pipeline_mode = #tpu.pipeline_mode<synchronous>, transform_indices = @transform_2, window_bounds = array<i64: 1, 256>}, {pipeline_mode = #tpu.pipeline_mode<synchronous>, transform_indices = @transform_3, window_bounds = array<i64: 256, 128>}, {pipeline_mode = #tpu.pipeline_mode<synchronous>, transform_indices = @transform_4, window_bounds = array<i64: 1, 128>}, {pipeline_mode = #tpu.pipeline_mode<synchronous>, transform_indices = @transform_5, window_bounds = array<i64: 128, 256>}, {pipeline_mode = #tpu.pipeline_mode<synchronous>, transform_indices = @transform_6, window_bounds = array<i64: 1, 256>}, {pipeline_mode = #tpu.pipeline_mode<synchronous>, transform_indices = @transform_7, window_bounds = array<i64: 256, 512>}, {pipeline_mode = #tpu.pipeline_mode<synchronous>, transform_indices = @transform_8, window_bounds = array<i64: 1, 512>}, {transform_indices = @transform_9, window_bounds = array<i64: 3, 8, 128>}]} {
    %c0 = arith.constant 0 : index
    %c0_0 = arith.constant 0 : index
    %0 = vector.load %arg1[%c0, %c0_0] : memref<8x16xf32, #tpu.memory_space<vmem>>, vector<8x16xf32>
    %1 = arith.truncf %0 : vector<8x16xf32> to vector<8x16xbf16>
    %c0_1 = arith.constant 0 : index
    %c0_2 = arith.constant 0 : index
    %2 = vector.load %arg2[%c0_1, %c0_2] : memref<16x256xbf16, #tpu.memory_space<vmem>>, vector<16x256xbf16>
    %cst = arith.constant dense<0.000000e+00> : vector<8x256xf32>
    %3 = tpu.matmul %1, %2, %cst {dimension_numbers = #tpu.dot_dimension_numbers<[1], [0], [0], [1], [0, 0, 1, 1], [], []>} : vector<8x16xbf16>, vector<16x256xbf16>, vector<8x256xf32> -> vector<8x256xf32>
    %c0_3 = arith.constant 0 : index
    %c0_4 = arith.constant 0 : index
    %4 = vector.load %arg3[%c0_3, %c0_4] : memref<1x256xf32, #tpu.memory_space<vmem>>, vector<1x256xf32>
    %5 = vector.broadcast %4 : vector<1x256xf32> to vector<8x256xf32>
    %6 = arith.addf %3, %5 : vector<8x256xf32>
    %cst_5 = arith.constant 0.000000e+00 : f32
    %7 = vector.broadcast %cst_5 : f32 to vector<8x256xf32>
    %8 = arith.maximumf %6, %7 : vector<8x256xf32>
    %9 = arith.truncf %8 : vector<8x256xf32> to vector<8x256xbf16>
    %c0_6 = arith.constant 0 : index
    %c0_7 = arith.constant 0 : index
    %10 = vector.load %arg4[%c0_6, %c0_7] : memref<256x128xbf16, #tpu.memory_space<vmem>>, vector<256x128xbf16>
    %cst_8 = arith.constant dense<0.000000e+00> : vector<8x128xf32>
    %11 = tpu.matmul %9, %10, %cst_8 {dimension_numbers = #tpu.dot_dimension_numbers<[1], [0], [0], [1], [0, 0, 1, 1], [], []>} : vector<8x256xbf16>, vector<256x128xbf16>, vector<8x128xf32> -> vector<8x128xf32>
    %c0_9 = arith.constant 0 : index
    %c0_10 = arith.constant 0 : index
    %12 = vector.load %arg5[%c0_9, %c0_10] : memref<1x128xf32, #tpu.memory_space<vmem>>, vector<1x128xf32>
    %13 = vector.broadcast %12 : vector<1x128xf32> to vector<8x128xf32>
    %14 = arith.addf %11, %13 : vector<8x128xf32>
    %cst_11 = arith.constant 0.000000e+00 : f32
    %15 = vector.broadcast %cst_11 : f32 to vector<8x128xf32>
    %16 = arith.maximumf %14, %15 : vector<8x128xf32>
    %17 = arith.truncf %16 : vector<8x128xf32> to vector<8x128xbf16>
    %c0_12 = arith.constant 0 : index
    %c0_13 = arith.constant 0 : index
    %18 = vector.load %arg6[%c0_12, %c0_13] : memref<128x256xbf16, #tpu.memory_space<vmem>>, vector<128x256xbf16>
    %cst_14 = arith.constant dense<0.000000e+00> : vector<8x256xf32>
    %19 = tpu.matmul %17, %18, %cst_14 {dimension_numbers = #tpu.dot_dimension_numbers<[1], [0], [0], [1], [0, 0, 1, 1], [], []>} : vector<8x128xbf16>, vector<128x256xbf16>, vector<8x256xf32> -> vector<8x256xf32>
    %c0_15 = arith.constant 0 : index
    %c0_16 = arith.constant 0 : index
    %20 = vector.load %arg7[%c0_15, %c0_16] : memref<1x256xf32, #tpu.memory_space<vmem>>, vector<1x256xf32>
    %21 = vector.broadcast %20 : vector<1x256xf32> to vector<8x256xf32>
    %22 = arith.addf %19, %21 : vector<8x256xf32>
    %cst_17 = arith.constant 0.000000e+00 : f32
    %23 = vector.broadcast %cst_17 : f32 to vector<8x256xf32>
    %24 = arith.maximumf %22, %23 : vector<8x256xf32>
    %25 = arith.truncf %24 : vector<8x256xf32> to vector<8x256xbf16>
    %c0_18 = arith.constant 0 : index
    %c0_19 = arith.constant 0 : index
    %26 = vector.load %arg8[%c0_18, %c0_19] : memref<256x512xbf16, #tpu.memory_space<vmem>>, vector<256x512xbf16>
    %cst_20 = arith.constant dense<0.000000e+00> : vector<8x512xf32>
    %27 = tpu.matmul %25, %26, %cst_20 {dimension_numbers = #tpu.dot_dimension_numbers<[1], [0], [0], [1], [0, 0, 1, 1], [], []>} : vector<8x256xbf16>, vector<256x512xbf16>, vector<8x512xf32> -> vector<8x512xf32>
    %c0_21 = arith.constant 0 : index
    %c0_22 = arith.constant 0 : index
    %28 = vector.load %arg9[%c0_21, %c0_22] : memref<1x512xf32, #tpu.memory_space<vmem>>, vector<1x512xf32>
    %29 = vector.broadcast %28 : vector<1x512xf32> to vector<8x512xf32>
    %30 = arith.addf %27, %29 : vector<8x512xf32>
    %31 = vector.extract_strided_slice %30 {offsets = [0, 384], sizes = [8, 128], strides = [1, 1]} : vector<8x512xf32> to vector<8x128xf32>
    %32 = vector.extract_strided_slice %30 {offsets = [0, 0], sizes = [8, 128], strides = [1, 1]} : vector<8x512xf32> to vector<8x128xf32>
    %cst_23 = arith.constant dense<0xFF800000> : vector<8xf32>
    %33 = vector.multi_reduction <maximumf>, %32, %cst_23 [1] : vector<8x128xf32> to vector<8xf32>
    %34 = vector.shape_cast %33 : vector<8xf32> to vector<8x1xf32>
    %35 = vector.broadcast %34 : vector<8x1xf32> to vector<8x128xf32>
    %36 = arith.subf %32, %35 : vector<8x128xf32>
    %37 = arith.addf %36, %31 : vector<8x128xf32>
    %c0_24 = arith.constant 0 : index
    %c0_25 = arith.constant 0 : index
    %c0_26 = arith.constant 0 : index
    %38 = vector.load %arg10[%c0_24, %c0_25, %c0_26] : memref<3x8x128xf32, #tpu.memory_space<vmem>>, vector<1x8x128xf32>
    %39 = vector.shape_cast %38 : vector<1x8x128xf32> to vector<8x128xf32>
    %40 = vector.shape_cast %37 : vector<8x128xf32> to vector<1x8x128xf32>
    tpu.vector_store %arg10[%c0_24, %c0_25, %c0_26], %40 {strides = array<i32>} : memref<3x8x128xf32, #tpu.memory_space<vmem>>, vector<1x8x128xf32>,
    %41 = vector.extract_strided_slice %30 {offsets = [0, 128], sizes = [8, 128], strides = [1, 1]} : vector<8x512xf32> to vector<8x128xf32>
    %cst_27 = arith.constant dense<0xFF800000> : vector<8xf32>
    %42 = vector.multi_reduction <maximumf>, %41, %cst_27 [1] : vector<8x128xf32> to vector<8xf32>
    %43 = vector.shape_cast %42 : vector<8xf32> to vector<8x1xf32>
    %44 = vector.broadcast %43 : vector<8x1xf32> to vector<8x128xf32>
    %45 = arith.subf %41, %44 : vector<8x128xf32>
    %46 = arith.addf %45, %31 : vector<8x128xf32>
    %c1 = arith.constant 1 : index
    %c0_28 = arith.constant 0 : index
    %c0_29 = arith.constant 0 : index
    %47 = vector.load %arg10[%c1, %c0_28, %c0_29] : memref<3x8x128xf32, #tpu.memory_space<vmem>>, vector<1x8x128xf32>
    %48 = vector.shape_cast %47 : vector<1x8x128xf32> to vector<8x128xf32>
    %49 = vector.shape_cast %46 : vector<8x128xf32> to vector<1x8x128xf32>
    tpu.vector_store %arg10[%c1, %c0_28, %c0_29], %49 {strides = array<i32>} : memref<3x8x128xf32, #tpu.memory_space<vmem>>, vector<1x8x128xf32>,
    %50 = vector.extract_strided_slice %30 {offsets = [0, 256], sizes = [8, 128], strides = [1, 1]} : vector<8x512xf32> to vector<8x128xf32>
    %cst_30 = arith.constant dense<0xFF800000> : vector<8xf32>
    %51 = vector.multi_reduction <maximumf>, %50, %cst_30 [1] : vector<8x128xf32> to vector<8xf32>
    %52 = vector.shape_cast %51 : vector<8xf32> to vector<8x1xf32>
    %53 = vector.broadcast %52 : vector<8x1xf32> to vector<8x128xf32>
    %54 = arith.subf %50, %53 : vector<8x128xf32>
    %55 = arith.addf %54, %31 : vector<8x128xf32>
    %c2 = arith.constant 2 : index
    %c0_31 = arith.constant 0 : index
    %c0_32 = arith.constant 0 : index
    %56 = vector.load %arg10[%c2, %c0_31, %c0_32] : memref<3x8x128xf32, #tpu.memory_space<vmem>>, vector<1x8x128xf32>
    %57 = vector.shape_cast %56 : vector<1x8x128xf32> to vector<8x128xf32>
    %58 = vector.shape_cast %55 : vector<8x128xf32> to vector<1x8x128xf32>
    tpu.vector_store %arg10[%c2, %c0_31, %c0_32], %58 {strides = array<i32>} : memref<3x8x128xf32, #tpu.memory_space<vmem>>, vector<1x8x128xf32>,
    return
  }
  func.func @transform_0(%arg0: i32) -> (i32, i32) {
    %c0_i32 = arith.constant 0 : i32
    %c0_i32_0 = arith.constant 0 : i32
    return %arg0, %c0_i32 : i32, i32
  }
  func.func @transform_1(%arg0: i32) -> (i32, i32) {
    %c0_i32 = arith.constant 0 : i32
    %c0_i32_0 = arith.constant 0 : i32
    %c0_i32_1 = arith.constant 0 : i32
    return %c0_i32, %c0_i32_0 : i32, i32
  }
  func.func @transform_2(%arg0: i32) -> (i32, i32) {
    %c0_i32 = arith.constant 0 : i32
    %c0_i32_0 = arith.constant 0 : i32
    %c0_i32_1 = arith.constant 0 : i32
    return %c0_i32, %c0_i32_0 : i32, i32
  }
  func.func @transform_3(%arg0: i32) -> (i32, i32) {
    %c0_i32 = arith.constant 0 : i32
    %c0_i32_0 = arith.constant 0 : i32
    %c0_i32_1 = arith.constant 0 : i32
    return %c0_i32, %c0_i32_0 : i32, i32
  }
  func.func @transform_4(%arg0: i32) -> (i32, i32) {
    %c0_i32 = arith.constant 0 : i32
    %c0_i32_0 = arith.constant 0 : i32
    %c0_i32_1 = arith.constant 0 : i32
    return %c0_i32, %c0_i32_0 : i32, i32
  }
  func.func @transform_5(%arg0: i32) -> (i32, i32) {
    %c0_i32 = arith.constant 0 : i32
    %c0_i32_0 = arith.constant 0 : i32
    %c0_i32_1 = arith.constant 0 : i32
    return %c0_i32, %c0_i32_0 : i32, i32
  }
  func.func @transform_6(%arg0: i32) -> (i32, i32) {
    %c0_i32 = arith.constant 0 : i32
    %c0_i32_0 = arith.constant 0 : i32
    %c0_i32_1 = arith.constant 0 : i32
    return %c0_i32, %c0_i32_0 : i32, i32
  }
  func.func @transform_7(%arg0: i32) -> (i32, i32) {
    %c0_i32 = arith.constant 0 : i32
    %c0_i32_0 = arith.constant 0 : i32
    %c0_i32_1 = arith.constant 0 : i32
    return %c0_i32, %c0_i32_0 : i32, i32
  }
  func.func @transform_8(%arg0: i32) -> (i32, i32) {
    %c0_i32 = arith.constant 0 : i32
    %c0_i32_0 = arith.constant 0 : i32
    %c0_i32_1 = arith.constant 0 : i32
    return %c0_i32, %c0_i32_0 : i32, i32
  }
  func.func @transform_9(%arg0: i32) -> (i32, i32, i32) {
    %c0_i32 = arith.constant 0 : i32
    %c0_i32_0 = arith.constant 0 : i32
    %c0_i32_1 = arith.constant 0 : i32
    return %c0_i32, %arg0, %c0_i32_0 : i32, i32, i32
  }
}

</mosaic_0001>

<bundles_post_ra>
// kernel: tpu_custom_call.1
= control target key start
LH: loop header
LB: loop body
LE: loop exit
PB: predicated region body
PF: predicated region fallthrough
CT: control target
= control target key end

     0   :  { %14 = vsyncpa [#allocation3], 0  ;;  %s1615_s0 = inlined_call_operand.hbm [shape: f32[8,16], index: 0, kind: input, shape index: {}]   ;;  %s1616_s1 = inlined_call_operand.hbm [shape: bf16[16,256], index: 1, kind: input, shape index: {}]   ;;  %s1617_s2 = inlined_call_operand.vmem [shape: f32[1,256], index: 2, kind: input, shape index: {}]   ;;  %s1618_s3 = inlined_call_operand.hbm [shape: bf16[256,128], index: 3, kind: input, shape index: {}]   ;;  %s1619_s4 = inlined_call_operand.vmem [shape: f32[1,128], index: 4, kind: input, shape index: {}]   ;;  %s1620_s5 = inlined_call_operand.hbm [shape: bf16[128,256], index: 5, kind: input, shape index: {}]   ;;  %s1621_s6 = inlined_call_operand.vmem [shape: f32[1,256], index: 6, kind: input, shape index: {}]   ;;  %s1622_s7 = inlined_call_operand.hbm [shape: bf16[256,512], index: 7, kind: input, shape index: {}]   ;;  %s1623_s8 = inlined_call_operand.vmem [shape: f32[1,512], index: 8, kind: input, shape index: {}]   ;;  %s1624_s9 = inlined_call_operand.hbm [shape: f32[3,8,128], index: 9, kind: output, shape index: {}]  }
   0x1   :  { %15 = vsyncpa [#allocation6], 0 }
   0x2   :  { %16 = vsyncpa [#allocation9], 0 }
   0x3   :  { %17 = vsyncpa [#allocation4], 0  ;;  %s1443_s30 = smov [#allocation5]   ;;  %s1303_s13 = scalar_lea.hbm %s1616_s1, 256 }
   0x4   :  { %s33_s10 = sshll.u32 %s1443_s30, 4  ;;  %p1304_p0 = scmp.ne.s32.totalorder %s1616_s1, %s1303_s13  ;;  %s34_s10 = int_to_ptr.vmem [resolvable:$true] %s33_s10 }
   0x5   :  { %p1307_p1 = scmp.lt.u32.totalorder %s1303_s13, %s1616_s1 }
   0x7   :  { %p1309_p2 = pnand %p1307_p1, %p1304_p0 }
   0x9   :  { %1312 = shalt.err (!%p1309_p2)
}
   0xa   :  { %s1313_s18 = scalar_lea.vmem %s34_s10, 256  ;;  %p1318_p4 = scmp.lt.s32.totalorder %s34_s10, %s34_s10 }
   0xb   :  { %p1314_p3 = scmp.ne.s32.totalorder %s34_s10, %s1313_s18  ;;  %p1319_p5 = scmp.lt.s32.totalorder %s1313_s18, %s1313_s18 }
   0xd   :  { %p1320_p6 = por %p1319_p5, %p1318_p4 }
   0xf   :  { %p1321_p7 = pnand %p1320_p6, %p1314_p3 }
  0x11   :  { %1324 = shalt.err (!%p1321_p7)
}
  0x12   :  { %s1444_s19 = smov 128   ;;  %s1445_s20 = smov 8  }
  0x13   :  { %39 = dma.hbm_to_vmem [thread:$0]  %s1616_s1, 256, %s34_s10, [#allocation6], %s1444_s19, %s1444_s19, %s1445_s20  }
  0x14   :  { %s1446_s23 = smov [#allocation8]   ;;  %s1447_s25 = smov [#allocation2]  }
  0x15   :  { %s61_s24 = sshll.u32 %s1446_s23, 4  ;;  %s24_s26 = sshll.u32 %s1447_s25, 4  ;;  %s62_s24 = int_to_ptr.vmem [resolvable:$true] %s61_s24  ;;  %s25_s26 = int_to_ptr.vmem [resolvable:$true] %s24_s26 }
  0x16   :  { %s1325_s29 = scalar_lea.hbm %s1620_s5, 2048 }
  0x17   :  { %p1326_p8 = scmp.ne.s32.totalorder %s1620_s5, %s1325_s29  ;;  %p1329_p9 = scmp.lt.u32.totalorder %s1325_s29, %s1620_s5 }
  0x19   :  { %p1331_p10 = pnand %p1329_p9, %p1326_p8 }
  0x1b   :  { %1334 = shalt.err (!%p1331_p10)
}
  0x1c   :  { %s1335_s1 = scalar_lea.vmem %s62_s24, 2048  ;;  %p1340_p12 = scmp.lt.s32.totalorder %s62_s24, %s62_s24 }
  0x1d   :  { %p1336_p11 = scmp.ne.s32.totalorder %s62_s24, %s1335_s1  ;;  %p1341_p13 = scmp.lt.s32.totalorder %s1335_s1, %s1335_s1 }
  0x1f   :  { %p1342_p0 = por %p1341_p13, %p1340_p12 }
  0x21   :  { %p1343_p1 = pnand %p1342_p0, %p1336_p11 }
  0x23   :  { %1346 = shalt.err (!%p1343_p1)
}
  0x24   :  { %67 = dma.hbm_to_vmem [thread:$0]  %s1620_s5, 2048, %s62_s24, [#allocation9], %s1444_s19, %s1444_s19, %s1445_s20  }
  0x25   :  { %s1347_s17 = scalar_lea.hbm %s1615_s0, 128 }
  0x26   :  { %p1348_p2 = scmp.ne.s32.totalorder %s1615_s0, %s1347_s17  ;;  %p1351_p3 = scmp.lt.u32.totalorder %s1347_s17, %s1615_s0 }
  0x28   :  { %p1353_p4 = pnand %p1351_p3, %p1348_p2 }
  0x2a   :  { %1356 = shalt.err (!%p1353_p4)
}
  0x2b   :  { %s1357_s25 = scalar_lea.vmem %s25_s26, 128  ;;  %p1362_p6 = scmp.lt.s32.totalorder %s25_s26, %s25_s26 }
  0x2c   :  { %p1358_p5 = scmp.ne.s32.totalorder %s25_s26, %s1357_s25  ;;  %p1363_p7 = scmp.lt.s32.totalorder %s1357_s25, %s1357_s25 }
  0x2e   :  { %p1364_p8 = por %p1363_p7, %p1362_p6 }
  0x30   :  { %p1365_p9 = pnand %p1364_p8, %p1358_p5 }
  0x32   :  { %1368 = shalt.err (!%p1365_p9)
}
  0x33   :  { %27 = dma.hbm_to_vmem [thread:$0]  %s1615_s0, 128, %s25_s26, [#allocation3]  }
  0x34   :  { %s1448_s27 = smov [#allocation7]   ;;  %s1369_s11 = scalar_lea.hbm %s1618_s3, 2048 }
  0x35   :  { %s47_s28 = sshll.u32 %s1448_s27, 4  ;;  %p1370_p10 = scmp.ne.s32.totalorder %s1618_s3, %s1369_s11  ;;  %s48_s28 = int_to_ptr.vmem [resolvable:$true] %s47_s28 }
  0x36   :  { %p1373_p11 = scmp.lt.u32.totalorder %s1369_s11, %s1618_s3 }
  0x38   :  { %p1375_p12 = pnand %p1373_p11, %p1370_p10 }
  0x3a   :  { %1378 = shalt.err (!%p1375_p12)
}
  0x3b   :  { %s1379_s14 = scalar_lea.vmem %s48_s28, 2048  ;;  %p1384_p0 = scmp.lt.s32.totalorder %s48_s28, %s48_s28 }
  0x3c   :  { %p1380_p13 = scmp.ne.s32.totalorder %s48_s28, %s1379_s14  ;;  %p1385_p1 = scmp.lt.s32.totalorder %s1379_s14, %s1379_s14 }
  0x3e   :  { %p1386_p2 = por %p1385_p1, %p1384_p0 }
  0x40   :  { %p1387_p3 = pnand %p1386_p2, %p1380_p13 }
  0x42   :  { %1390 = shalt.err (!%p1387_p3)
}
  0x43   :  { %s1449_s0 = smov 64   ;;  %s1450_s26 = smov 4  }
  0x44   :  { %53 = dma.hbm_to_vmem [thread:$0]  %s1618_s3, 2048, %s48_s28, [#allocation6], %s1449_s0, %s1449_s0, %s1450_s26  }
  0x45   :  { %s1451_s17 = smov [#allocation10]   ;;  %s1391_s23 = scalar_lea.hbm %s1622_s7, 8192 }
  0x46   :  { %s75_s18 = sshll.u32 %s1451_s17, 4  ;;  %p1392_p4 = scmp.ne.s32.totalorder %s1622_s7, %s1391_s23  ;;  %s76_s18 = int_to_ptr.vmem [resolvable:$true] %s75_s18 }
  0x47   :  { %p1395_p5 = scmp.lt.u32.totalorder %s1391_s23, %s1622_s7 }
  0x49   :  { %p1397_p6 = pnand %p1395_p5, %p1392_p4 }
  0x4b   :  { %1400 = shalt.err (!%p1397_p6)
}
  0x4c   :  { %s1401_s29 = scalar_lea.vmem %s76_s18, 8192  ;;  %p1406_p8 = scmp.lt.s32.totalorder %s76_s18, %s76_s18 }
  0x4d   :  { %p1402_p7 = scmp.ne.s32.totalorder %s76_s18, %s1401_s29  ;;  %p1407_p9 = scmp.lt.s32.totalorder %s1401_s29, %s1401_s29 }
  0x4f   :  { %p1408_p10 = por %p1407_p9, %p1406_p8 }
  0x51   :  { %p1409_p11 = pnand %p1408_p10, %p1402_p7 }
  0x53   :  { %1412 = shalt.err (!%p1409_p11)
}
  0x54   :  { %s1452_s3 = smov 256   ;;  %s1453_s28 = smov 16  }
  0x55   :  { %81 = dma.hbm_to_vmem [thread:$0]  %s1622_s7, 8192, %s76_s18, [#allocation9], %s1452_s3, %s1452_s3, %s1453_s28  }
  0x56   :  { %1435 = dma.done.wait [#allocation3], 128  }
  0x57   :  { %1436 = vsyncadd [#allocation3], 4294967168 }
  0x58   :  { %1437 = dma.done.wait [#allocation6], 2304  }
  0x59   :  { %1438 = vsyncadd [#allocation6], 4294964992 }
  0x5a   :  { %1439 = dma.done.wait [#allocation9], 10240  }
  0x5b   :  { %1440 = vsyncadd [#allocation9], 4294957056  ;;  %v1454_v0 = vmov 0   ;;  %v1164_v1 = vld [vmem:[#allocation5 + $0x4] ss:$8 sps:$4 sm:$0xff]   ;;  %v100_v3 = vld [vmem:[#allocation2] sm:$0xff]  ;;  %v106_v33 = vlaneseq }
  0x5c   :  { %162 = vmatprep.mubr.bf16.mxu0 %v1454_v0  ;;  %v1166_v2 = vld [vmem:[#allocation5] ss:$8 sps:$4 sm:$0xff]   ;;  %130 = vmatprep.subr.bf16.mxu0 %v1164_v1  ;;  %v101_v4 = vpack.c.bf16 %v100_v3, %v100_v3  ;;  %v1167_v5 = vld [vmem:[#allocation7 + $0x40] sm:$0xff]   ;;  %vm126_vm0 = vcmask 130048   ;;  %v1169_v7 = vld [vmem:[#allocation7 + $0x48] sm:$0xff]  }
  0x5d   :  { %131 = vmatpush1.bf16.msra.mxu0 %v1166_v2  ;;  %v1168_v6 = vld [vmem:[#allocation7] sm:$0xff]   ;;  %1129 = vmatprep.subr.bf16.mxu1 %v1167_v5  ;;  %v1170_v8 = vld [vmem:[#allocation7 + $0x8] sm:$0xff]   ;;  %v1171_v9 = vld [vmem:[#allocation7 + $0x50] sm:$0xff]   ;;  %v1572_v34 = vshrl.u32 %v106_v33, 7 }
  0x5e   :  { %1130 = vmatpush3.bf16.msra.mxu1 %v1168_v6  ;;  %v1172_v10 = vld [vmem:[#allocation7 + $0x10] sm:$0xff]   ;;  %v1173_v11 = vld [vmem:[#allocation7 + $0x58] sm:$0xff]   ;;  %v1175_v13 = vld [vmem:[#allocation7 + $0x60] sm:$0xff]  }
  0x5f   :  { %1131 = vmatprep.subr.bf16.mxu1 %v1169_v7  ;;  %v1174_v12 = vld [vmem:[#allocation7 + $0x18] sm:$0xff]   ;;  %v1176_v14 = vld [vmem:[#allocation7 + $0x20] sm:$0xff]   ;;  %v1177_v15 = vld [vmem:[#allocation7 + $0x68] sm:$0xff]   ;;  %v1575_v35 = vsub.s32 0, %v1572_v34  ;;  %v1581_v37 = vsub.s32 1, %v1572_v34 }
  0x60   :  { %1031 = vmatmul.mubr.msk.bf16.vlgmr.msra.gmra.mrb[0].mxu0 %vm126_vm0, %v101_v4  ;;  %v1178_v16 = vld [vmem:[#allocation7 + $0x28] sm:$0xff]   ;;  %v1179_v17 = vld [vmem:[#allocation7 + $0x70] sm:$0xff]   ;;  %v1181_v19 = vld [vmem:[#allocation7 + $0x78] sm:$0xff]  }
  0x61   :  { %492 = vmatprep.mubr.bf16.mxu0 %v1454_v0  ;;  %v1180_v18 = vld [vmem:[#allocation7 + $0x30] sm:$0xff]   ;;  %v1182_v20 = vld [vmem:[#allocation7 + $0x38] sm:$0xff]   ;;  %v1183_v21 = vld [vmem:[#allocation8] ss:$8 sps:$4 sm:$0xff]  }
  0x62   :  { %1132 = vmatpush3.bf16.msra.mxu1 %v1170_v8  ;;  %v1185_v22 = vld [vmem:[#allocation8 + $0x4] ss:$8 sps:$4 sm:$0xff]   ;;  %v1188_v23 = vld [vmem:[#allocation8 + $0x14] ss:$8 sps:$4 sm:$0xff]   ;;  %v1186_v24 = vld [vmem:[#allocation8 + $0x10] ss:$8 sps:$4 sm:$0xff]  }
  0x63   :  { %1133 = vmatprep.subr.bf16.mxu1 %v1171_v9  ;;  %460 = vmatprep.subr.bf16.mxu0 %v1185_v22  ;;  %v1191_v25 = vld [vmem:[#allocation8 + $0x24] ss:$8 sps:$4 sm:$0xff]   ;;  %v1189_v26 = vld [vmem:[#allocation8 + $0x20] ss:$8 sps:$4 sm:$0xff]   ;;  %v1194_v27 = vld [vmem:[#allocation8 + $0x34] ss:$8 sps:$4 sm:$0xff]  }
  0x64   :  { %461 = vmatpush1.bf16.msra.mxu0 %v1183_v21  ;;  %v1192_v28 = vld [vmem:[#allocation8 + $0x30] ss:$8 sps:$4 sm:$0xff]   ;;  %v1197_v29 = vld [vmem:[#allocation8 + $0x44] ss:$8 sps:$4 sm:$0xff]   ;;  %v1195_v30 = vld [vmem:[#allocation8 + $0x40] ss:$8 sps:$4 sm:$0xff]  }
  0x65   :  { %462 = vmatprep.subr.bf16.mxu0 %v1188_v23  ;;  %v1200_v31 = vld [vmem:[#allocation8 + $0x54] ss:$8 sps:$4 sm:$0xff]   ;;  %v1198_v32 = vld [vmem:[#allocation8 + $0x50] ss:$8 sps:$4 sm:$0xff]   ;;  %v104_v36 = vld [vmem:[%s1617_s2] sm:$0x3] }
  0x66   :  { %1134 = vmatpush3.bf16.msra.mxu1 %v1172_v10  ;;  %v109_v38 = vrot.slane %v104_v36, %v1575_v35  ;;  %v113_v39 = vrot.slane %v104_v36, %v1581_v37  ;;  %v1203_v50 = vld [vmem:[#allocation8 + $0x64] ss:$8 sps:$4 sm:$0xff]   ;;  %v1201_v51 = vld [vmem:[#allocation8 + $0x60] ss:$8 sps:$4 sm:$0xff]   ;;  %v1206_v52 = vld [vmem:[#allocation8 + $0x74] ss:$8 sps:$4 sm:$0xff]  }
  0x67   :  { %1135 = vmatprep.subr.bf16.mxu1 %v1173_v11  ;;  %v1204_v53 = vld [vmem:[#allocation8 + $0x70] ss:$8 sps:$4 sm:$0xff]   ;;  %v1209_v55 = vld [vmem:[#allocation10 + $0x4] ss:$16 sps:$4 sm:$0xff]   ;;  %v1212_v56 = vld [vmem:[#allocation10 + $0xc] ss:$16 sps:$4 sm:$0xff]  }
  0x68   :  { %463 = vmatpush1.bf16.msra.mxu0 %v1186_v24  ;;  %v1207_v54 = vld [vmem:[#allocation10] ss:$16 sps:$4 sm:$0xff]   ;;  %v1215_v57 = vld [vmem:[#allocation10 + $0x24] ss:$16 sps:$4 sm:$0xff]   ;;  %v1230_v33 = vld [vmem:[#allocation10 + $0x6c] ss:$16 sps:$4 sm:$0xff]  }
  0x69   :  { %464 = vmatprep.subr.bf16.mxu0 %v1191_v25  ;;  %v1213_v58 = vld [vmem:[#allocation10 + $0x20] ss:$16 sps:$4 sm:$0xff]   ;;  %v1221_v59 = vld [vmem:[#allocation10 + $0x44] ss:$16 sps:$4 sm:$0xff]   ;;  %v1228_v36 = vld [vmem:[#allocation10 + $0x68] ss:$16 sps:$4 sm:$0xff]  }
  0x6a   :  { %1136 = vmatpush3.bf16.msra.mxu1 %v1174_v12  ;;  %v1219_v60 = vld [vmem:[#allocation10 + $0x40] ss:$16 sps:$4 sm:$0xff]   ;;  %v1227_v61 = vld [vmem:[#allocation10 + $0x64] ss:$16 sps:$4 sm:$0xff]  }
  0x6b   :  { %1137 = vmatprep.subr.bf16.mxu1 %v1175_v13  ;;  %v1225_v62 = vld [vmem:[#allocation10 + $0x60] ss:$16 sps:$4 sm:$0xff]   ;;  %v1233_v63 = vld [vmem:[#allocation10 + $0x84] ss:$16 sps:$4 sm:$0xff]  }
  0x6c   :  { %465 = vmatpush1.bf16.msra.mxu0 %v1189_v26  ;;  %v1231_v0 = vld [vmem:[#allocation10 + $0x80] ss:$16 sps:$4 sm:$0xff]   ;;  %v1239_v1 = vld [vmem:[#allocation10 + $0xa4] ss:$16 sps:$4 sm:$0xff]  }
  0x6d   :  { %466 = vmatprep.subr.bf16.mxu0 %v1194_v27  ;;  %v1237_v2 = vld [vmem:[#allocation10 + $0xa0] ss:$16 sps:$4 sm:$0xff]   ;;  %v1245_v3 = vld [vmem:[#allocation10 + $0xc4] ss:$16 sps:$4 sm:$0xff]   ;;  %v1210_v27 = vld [vmem:[#allocation10 + $0x8] ss:$16 sps:$4 sm:$0xff]  }
  0x6e   :  { %1138 = vmatpush3.bf16.msra.mxu1 %v1176_v14  ;;  %v1243_v4 = vld [vmem:[#allocation10 + $0xc0] ss:$16 sps:$4 sm:$0xff]   ;;  %v1251_v5 = vld [vmem:[#allocation10 + $0xe4] ss:$16 sps:$4 sm:$0xff]  }
  0x6f   :  { %1139 = vmatprep.subr.bf16.mxu1 %v1177_v15  ;;  %v1249_v6 = vld [vmem:[#allocation10 + $0xe0] ss:$16 sps:$4 sm:$0xff]   ;;  %v1257_v7 = vld [vmem:[#allocation10 + $0x104] ss:$16 sps:$4 sm:$0xff]  }
  0x70   :  { %467 = vmatpush1.bf16.msra.mxu0 %v1192_v28  ;;  %v1255_v8 = vld [vmem:[#allocation10 + $0x100] ss:$16 sps:$4 sm:$0xff]   ;;  %v1263_v9 = vld [vmem:[#allocation10 + $0x124] ss:$16 sps:$4 sm:$0xff]  }
  0x71   :  { %468 = vmatprep.subr.bf16.mxu0 %v1197_v29  ;;  %v1261_v10 = vld [vmem:[#allocation10 + $0x120] ss:$16 sps:$4 sm:$0xff]   ;;  %v1269_v11 = vld [vmem:[#allocation10 + $0x144] ss:$16 sps:$4 sm:$0xff]   ;;  %v1218_v29 = vld [vmem:[#allocation10 + $0x2c] ss:$16 sps:$4 sm:$0xff]  }
  0x72   :  { %1140 = vmatpush3.bf16.msra.mxu1 %v1178_v16  ;;  %v1267_v12 = vld [vmem:[#allocation10 + $0x140] ss:$16 sps:$4 sm:$0xff]   ;;  %v1275_v13 = vld [vmem:[#allocation10 + $0x164] ss:$16 sps:$4 sm:$0xff]  }
  0x73   :  { %1141 = vmatprep.subr.bf16.mxu1 %v1179_v17  ;;  %v1273_v14 = vld [vmem:[#allocation10 + $0x160] ss:$16 sps:$4 sm:$0xff]   ;;  %v1281_v15 = vld [vmem:[#allocation10 + $0x184] ss:$16 sps:$4 sm:$0xff]  }
  0x74   :  { %469 = vmatpush1.bf16.msra.mxu0 %v1195_v30  ;;  %v1279_v16 = vld [vmem:[#allocation10 + $0x180] ss:$16 sps:$4 sm:$0xff]   ;;  %v1287_v17 = vld [vmem:[#allocation10 + $0x1a4] ss:$16 sps:$4 sm:$0xff]   ;;  %v1216_v30 = vld [vmem:[#allocation10 + $0x28] ss:$16 sps:$4 sm:$0xff]  }
  0x75   :  { %470 = vmatprep.subr.bf16.mxu0 %v1200_v31  ;;  %v1224_v31 = vld [vmem:[#allocation10 + $0x4c] ss:$16 sps:$4 sm:$0xff]  }
  0x76   :  { %1142 = vmatpush3.bf16.msra.mxu1 %v1180_v18  ;;  %v1285_v18 = vld [vmem:[#allocation10 + $0x1a0] ss:$16 sps:$4 sm:$0xff]  }
  0x77   :  { %1143 = vmatprep.subr.bf16.mxu1 %v1181_v19 }
  0x78   :  { %471 = vmatpush1.bf16.msra.mxu0 %v1198_v32  ;;  %v1222_v32 = vld [vmem:[#allocation10 + $0x48] ss:$16 sps:$4 sm:$0xff]  }
  0x79   :  { %472 = vmatprep.subr.bf16.mxu0 %v1203_v50  ;;  %v1272_v50 = vld [vmem:[#allocation10 + $0x14c] ss:$16 sps:$4 sm:$0xff]  }
  0x7a   :  { %1144 = vmatpush3.bf16.msra.mxu1 %v1182_v20  ;;  %v1032_v20 = vld [vmem:[%s1619_s4] ss:$0 sm:$0xff] }
  0x7b   :  { %911 = vmatprep.subr.bf16.mxu1 %v1209_v55  ;;  %v1282_v55 = vld [vmem:[#allocation10 + $0x188] ss:$16 sps:$4 sm:$0xff]  }
  0x7c   :  { %473 = vmatpush1.bf16.msra.mxu0 %v1201_v51  ;;  %v1270_v51 = vld [vmem:[#allocation10 + $0x148] ss:$16 sps:$4 sm:$0xff]  }
  0x7d   :  { %474 = vmatprep.subr.bf16.mxu0 %v1206_v52  ;;  %v1278_v52 = vld [vmem:[#allocation10 + $0x16c] ss:$16 sps:$4 sm:$0xff]  }
  0x80   :  { %475 = vmatpush1.bf16.msra.mxu0 %v1204_v53  ;;  %v1276_v53 = vld [vmem:[#allocation10 + $0x168] ss:$16 sps:$4 sm:$0xff]  }
  0x81   :  { %952 = vmatprep.subr.bf16.mxu0 %v1212_v56  ;;  %v1290_v56 = vld [vmem:[#allocation10 + $0x1ac] ss:$16 sps:$4 sm:$0xff]  }
 0x133   :  { %v164_v40 = vpop.f32.mrb[0].mxu0 }
 0x134   :  { %v165_v41 = vadd.f32 %v164_v40, %v109_v38  ;;  %v166_v42 = vpop.f32.mrb[1].mxu0  ;;  %v1236_v38 = vld [vmem:[#allocation10 + $0x8c] ss:$16 sps:$4 sm:$0xff]  }
 0x135   :  { %v167_v43 = vadd.f32 %v166_v42, %v113_v39  ;;  %v168_v44 = vpop.f32.mrb[2].mxu0  ;;  %v1234_v39 = vld [vmem:[#allocation10 + $0x88] ss:$16 sps:$4 sm:$0xff]   ;;  %v1242_v40 = vld [vmem:[#allocation10 + $0xac] ss:$16 sps:$4 sm:$0xff]  }
 0x136   :  { %v171_v45 = vmax.f32 %v165_v41, 0.0  ;;  %v169_v46 = vpop.f32.mrb[3].mxu0  ;;  %v1240_v41 = vld [vmem:[#allocation10 + $0xa8] ss:$16 sps:$4 sm:$0xff]   ;;  %v1248_v42 = vld [vmem:[#allocation10 + $0xcc] ss:$16 sps:$4 sm:$0xff]  }
 0x137   :  { %v172_v47 = vmax.f32 %v167_v43, 0.0  ;;  %v1246_v43 = vld [vmem:[#allocation10 + $0xc8] ss:$16 sps:$4 sm:$0xff]   ;;  %v1254_v44 = vld [vmem:[#allocation10 + $0xec] ss:$16 sps:$4 sm:$0xff]  }
 0x138   :  { %v173_v49 = vpack.c.bf16 %v171_v45, %v171_v45  ;;  %v1252_v45 = vld [vmem:[#allocation10 + $0xe8] ss:$16 sps:$4 sm:$0xff]   ;;  %v1260_v46 = vld [vmem:[#allocation10 + $0x10c] ss:$16 sps:$4 sm:$0xff]  }
 0x139   :  { %v174_v48 = vpack.c.bf16 %v172_v47, %v172_v47  ;;  %v1258_v47 = vld [vmem:[#allocation10 + $0x108] ss:$16 sps:$4 sm:$0xff]  }
 0x13b   :  { %342 = vmatprep.mubr.bf16.mxu1 %v174_v48  ;;  %v1266_v48 = vld [vmem:[#allocation10 + $0x12c] ss:$16 sps:$4 sm:$0xff]  }
 0x13c   :  { %343 = vmatmul.mubr.bf16.vlgmr.msra.gmra.mrb[0].mxu1 %v173_v49  ;;  %v1264_v49 = vld [vmem:[#allocation10 + $0x128] ss:$16 sps:$4 sm:$0xff]  }
 0x13d   :  { %912 = vmatpush1.bf16.msra.mxu1 %v1207_v54  ;;  %v1284_v54 = vld [vmem:[#allocation10 + $0x18c] ss:$16 sps:$4 sm:$0xff]  }
 0x13e   :  { %913 = vmatprep.subr.bf16.mxu1 %v1215_v57  ;;  %v1288_v57 = vld [vmem:[#allocation10 + $0x1a8] ss:$16 sps:$4 sm:$0xff]  }
 0x141   :  { %914 = vmatpush1.bf16.msra.mxu1 %v1213_v58  ;;  %v1293_v58 = vld [vmem:[#allocation10 + $0x1c4] ss:$16 sps:$4 sm:$0xff]  }
 0x142   :  { %915 = vmatprep.subr.bf16.mxu1 %v1221_v59  ;;  %v1296_v59 = vld [vmem:[#allocation10 + $0x1cc] ss:$16 sps:$4 sm:$0xff]  }
 0x145   :  { %916 = vmatpush1.bf16.msra.mxu1 %v1219_v60  ;;  %v1291_v60 = vld [vmem:[#allocation10 + $0x1c0] ss:$16 sps:$4 sm:$0xff]  }
 0x146   :  { %917 = vmatprep.subr.bf16.mxu1 %v1227_v61  ;;  %v1294_v61 = vld [vmem:[#allocation10 + $0x1c8] ss:$16 sps:$4 sm:$0xff]  }
 0x149   :  { %918 = vmatpush1.bf16.msra.mxu1 %v1225_v62  ;;  %v1299_v62 = vld [vmem:[#allocation10 + $0x1e4] ss:$16 sps:$4 sm:$0xff]  }
 0x14a   :  { %919 = vmatprep.subr.bf16.mxu1 %v1233_v63  ;;  %v1302_v63 = vld [vmem:[#allocation10 + $0x1ec] ss:$16 sps:$4 sm:$0xff]  }
 0x14d   :  { %920 = vmatpush1.bf16.msra.mxu1 %v1231_v0  ;;  %v1297_v0 = vld [vmem:[#allocation10 + $0x1e0] ss:$16 sps:$4 sm:$0xff]  }
 0x14e   :  { %921 = vmatprep.subr.bf16.mxu1 %v1239_v1  ;;  %v1300_v1 = vld [vmem:[#allocation10 + $0x1e8] ss:$16 sps:$4 sm:$0xff]  }
 0x151   :  { %922 = vmatpush1.bf16.msra.mxu1 %v1237_v2  ;;  %v368_v2 = vld [vmem:[%s1621_s6] sm:$0x3] }
 0x152   :  { %923 = vmatprep.subr.bf16.mxu1 %v1245_v3  ;;  %v373_v3 = vrot.slane %v368_v2, %v1575_v35 }
 0x155   :  { %924 = vmatpush1.bf16.msra.mxu1 %v1243_v4  ;;  %v377_v4 = vrot.slane %v368_v2, %v1581_v37 }
 0x156   :  { %925 = vmatprep.subr.bf16.mxu1 %v1251_v5 }
 0x159   :  { %926 = vmatpush1.bf16.msra.mxu1 %v1249_v6 }
 0x15a   :  { %927 = vmatprep.subr.bf16.mxu1 %v1257_v7 }
 0x15d   :  { %928 = vmatpush1.bf16.msra.mxu1 %v1255_v8 }
 0x15e   :  { %929 = vmatprep.subr.bf16.mxu1 %v1263_v9 }
 0x161   :  { %930 = vmatpush1.bf16.msra.mxu1 %v1261_v10 }
 0x162   :  { %931 = vmatprep.subr.bf16.mxu1 %v1269_v11 }
 0x165   :  { %932 = vmatpush1.bf16.msra.mxu1 %v1267_v12 }
 0x166   :  { %933 = vmatprep.subr.bf16.mxu1 %v1275_v13 }
 0x169   :  { %934 = vmatpush1.bf16.msra.mxu1 %v1273_v14 }
 0x16a   :  { %935 = vmatprep.subr.bf16.mxu1 %v1281_v15  ;;  %v581_v15 = vsub.s32 2, %v1572_v34 }
 0x16d   :  { %936 = vmatpush1.bf16.msra.mxu1 %v1279_v16  ;;  %v569_v16 = vld [vmem:[%s1623_s8] sm:$0xf]  ;;  %s1455_s8 = smov [#allocation11]  }
 0x16e   :  { %937 = vmatprep.subr.bf16.mxu1 %v1287_v17  ;;  %v574_v17 = vrot.slane %v569_v16, %v1575_v35  ;;  %s1015_s14 = sshll.u32 %s1455_s8, 4  ;;  %s1016_s14 = int_to_ptr.vmem [resolvable:$true] %s1015_s14 }
 0x16f   :  { %s1413_s0 = scalar_lea.vmem %s1016_s14, 384  ;;  %p1418_p13 = scmp.lt.s32.totalorder %s1016_s14, %s1016_s14 }
 0x170   :  { %p1414_p12 = scmp.ne.s32.totalorder %s1016_s14, %s1413_s0  ;;  %p1419_p0 = scmp.lt.s32.totalorder %s1413_s0, %s1413_s0 }
 0x171   :  { %938 = vmatpush1.bf16.msra.mxu1 %v1285_v18  ;;  %v582_v18 = vrot.slane %v569_v16, %v581_v15 }
 0x172   :  { %939 = vmatprep.subr.bf16.mxu1 %v1293_v58  ;;  %p1420_p1 = por %p1419_p0, %p1418_p13 }
 0x174   :  { %p1421_p2 = pnand %p1420_p1, %p1414_p12 }
 0x175   :  { %940 = vmatpush1.bf16.msra.mxu1 %v1291_v60 }
 0x176   :  { %941 = vmatprep.subr.bf16.mxu1 %v1299_v62 }
 0x179   :  { %942 = vmatpush1.bf16.msra.mxu1 %v1297_v0 }
 0x20f   :  { %v1145_v19 = vpop.f32.mrb[0].mxu1 }
 0x210   :  { %v1146_v21 = vpop.f32.mrb[1].mxu1 }
 0x211   :  { %v1147_v22 = vadd.f32 %v1146_v21, %v1145_v19  ;;  %v1148_v23 = vpop.f32.mrb[2].mxu1 }
 0x212   :  { %v1149_v24 = vpop.f32.mrb[3].mxu1  ;;  %v578_v23 = vrot.slane %v569_v16, %v1581_v37 }
 0x213   :  { %v345_v25 = vadd.f32 %v1147_v22, %v1032_v20 }
 0x215   :  { %v350_v26 = vmax.f32 %v345_v25, 0.0 }
 0x217   :  { %v351_v28 = vpack.c.bf16 %v350_v26, %v350_v26 }
 0x219   :  { %493 = vmatmul.mubr.bf16.vlgmr.msra.gmra.mrb[4].mxu0 %v351_v28 }
 0x21a   :  { %953 = vmatpush1.bf16.msra.mxu0 %v1210_v27 }
 0x21b   :  { %954 = vmatprep.subr.bf16.mxu0 %v1218_v29 }
 0x21e   :  { %955 = vmatpush1.bf16.msra.mxu0 %v1216_v30 }
 0x21f   :  { %956 = vmatprep.subr.bf16.mxu0 %v1224_v31  ;;  %v585_v31 = vsub.s32 3, %v1572_v34 }
 0x221   :  { %v586_v35 = vrot.slane %v569_v16, %v585_v31 }
 0x222   :  { %957 = vmatpush1.bf16.msra.mxu0 %v1222_v32 }
 0x223   :  { %958 = vmatprep.subr.bf16.mxu0 %v1230_v33 }
 0x226   :  { %959 = vmatpush1.bf16.msra.mxu0 %v1228_v36 }
 0x227   :  { %960 = vmatprep.subr.bf16.mxu0 %v1236_v38 }
 0x22a   :  { %961 = vmatpush1.bf16.msra.mxu0 %v1234_v39 }
 0x22b   :  { %962 = vmatprep.subr.bf16.mxu0 %v1242_v40 }
 0x22e   :  { %963 = vmatpush1.bf16.msra.mxu0 %v1240_v41 }
 0x22f   :  { %964 = vmatprep.subr.bf16.mxu0 %v1248_v42 }
 0x232   :  { %965 = vmatpush1.bf16.msra.mxu0 %v1246_v43 }
 0x233   :  { %966 = vmatprep.subr.bf16.mxu0 %v1254_v44 }
 0x236   :  { %967 = vmatpush1.bf16.msra.mxu0 %v1252_v45 }
 0x237   :  { %968 = vmatprep.subr.bf16.mxu0 %v1260_v46 }
 0x23a   :  { %969 = vmatpush1.bf16.msra.mxu0 %v1258_v47 }
 0x23b   :  { %970 = vmatprep.subr.bf16.mxu0 %v1266_v48 }
 0x23e   :  { %971 = vmatpush1.bf16.msra.mxu0 %v1264_v49 }
 0x23f   :  { %972 = vmatprep.subr.bf16.mxu0 %v1272_v50 }
 0x242   :  { %973 = vmatpush1.bf16.msra.mxu0 %v1270_v51 }
 0x243   :  { %974 = vmatprep.subr.bf16.mxu0 %v1278_v52 }
 0x246   :  { %975 = vmatpush1.bf16.msra.mxu0 %v1276_v53 }
 0x247   :  { %976 = vmatprep.subr.bf16.mxu0 %v1284_v54 }
 0x24a   :  { %977 = vmatpush1.bf16.msra.mxu0 %v1282_v55 }
 0x24b   :  { %978 = vmatprep.subr.bf16.mxu0 %v1290_v56 }
 0x24e   :  { %979 = vmatpush1.bf16.msra.mxu0 %v1288_v57 }
 0x24f   :  { %980 = vmatprep.subr.bf16.mxu0 %v1296_v59 }
 0x252   :  { %981 = vmatpush1.bf16.msra.mxu0 %v1294_v61 }
 0x253   :  { %982 = vmatprep.subr.bf16.mxu0 %v1302_v63 }
 0x256   :  { %983 = vmatpush1.bf16.msra.mxu0 %v1300_v1 }
 0x2ec   :  { %v494_v5 = vpop.f32.mrb[4].mxu0 }
 0x2ed   :  { %v495_v6 = vadd.f32 %v494_v5, %v373_v3  ;;  %v496_v7 = vpop.f32.mrb[5].mxu0 }
 0x2ee   :  { %v497_v8 = vadd.f32 %v496_v7, %v377_v4  ;;  %v498_v9 = vpop.f32.mrb[6].mxu0 }
 0x2ef   :  { %v501_v10 = vmax.f32 %v495_v6, 0.0  ;;  %v499_v11 = vpop.f32.mrb[7].mxu0 }
 0x2f0   :  { %v502_v12 = vmax.f32 %v497_v8, 0.0 }
 0x2f1   :  { %v503_v14 = vpack.c.bf16 %v501_v10, %v501_v10 }
 0x2f2   :  { %v504_v13 = vpack.c.bf16 %v502_v12, %v502_v12 }
 0x2f4   :  { %943 = vmatprep.mubr.bf16.mxu1 %v504_v13  ;;  %984 = vmatprep.mubr.bf16.mxu0 %v504_v13 }
 0x2f5   :  { %944 = vmatmul.mubr.bf16.vlgmr.msra.gmra.mrb[4].mxu1 %v503_v14  ;;  %985 = vmatmul.mubr.bf16.vlgmr.msra.gmra.mrb[8].mxu0 %v503_v14 }
 0x3c8   :  { %v945_v19 = vpop.f32.mrb[4].mxu1  ;;  %v986_v20 = vpop.f32.mrb[8].mxu0 }
 0x3c9   :  { %v946_v21 = vadd.f32 %v945_v19, %v574_v17  ;;  %v987_v22 = vadd.f32 %v986_v20, %v582_v18  ;;  %v947_v24 = vpop.f32.mrb[5].mxu1  ;;  %v988_v25 = vpop.f32.mrb[9].mxu0 }
 0x3ca   :  { %v949_v26 = vpop.f32.mrb[6].mxu1  ;;  %v990_v27 = vpop.f32.mrb[10].mxu0  ;;  %v948_v30 = vadd.f32 %v947_v24, %v578_v23  ;;  %v989_v36 = vadd.f32 %v988_v25, %v586_v35 }
 0x3cb   :  { %v991_v28 = vpop.f32.mrb[11].mxu0  ;;  %1004 = vmax.xlane.f32.xlu1 %v987_v22  ;;  %v950_v29 = vpop.f32.mrb[7].mxu1  ;;  %993 = vmax.xlane.f32.xlu0 %v946_v21 }
 0x3cf   :  { %998 = vmax.xlane.f32.xlu0 %v948_v30 }
 0x458   :  { %v1005_v32 = vpop.xlane.xlu1 %1004  ;;  %v994_v33 = vpop.xlane.xlu0 %993 }
 0x459   :  { %v1006_v38 = vsub.f32 %v987_v22, %v1005_v32  ;;  %v995_v39 = vsub.f32 %v946_v21, %v994_v33 }
 0x45b   :  { %v1007_v40 = vadd.f32 %v1006_v38, %v989_v36  ;;  %v996_v37 = vadd.f32 %v995_v39, %v989_v36 }
 0x45c   :  { %v999_v41 = vpop.xlane.xlu0 %998 }
 0x45d   :  { %1009 = vst [vmem:[#allocation11 + $0x10] sm:$0xff] %v1007_v40  ;;  %997 = vst [vmem:[#allocation11] sm:$0xff] %v996_v37  ;;  %v1000_v42 = vsub.f32 %v948_v30, %v999_v41 }
 0x45f   :  { %v1001_v43 = vadd.f32 %v1000_v42, %v989_v36 }
 0x461   :  { %1003 = vst [vmem:[#allocation11 + $0x8] sm:$0xff] %v1001_v43 }
 0x462   :  { %1424 = shalt.err (!%p1421_p2)
}
 0x463   :  { %s1425_s16 = scalar_lea.hbm %s1624_s9, 384 }
 0x464   :  { %p1426_p3 = scmp.ne.s32.totalorder %s1624_s9, %s1425_s16  ;;  %p1429_p4 = scmp.lt.u32.totalorder %s1425_s16, %s1624_s9 }
 0x466   :  { %p1431_p5 = pnand %p1429_p4, %p1426_p3 }
 0x468   :  { %1434 = shalt.err (!%p1431_p5)
}
 0x469   :  { %1021 = dma.vmem_to_hbm [thread:$0]  %s1016_s14, 384, %s1624_s9, [#allocation4], %s1444_s19, %s1444_s19, %s1445_s20  }
 0x46a   :  { %1441 = dma.done.wait [#allocation4], 384  }
 0x46b   :  { %1442 = vsyncadd [#allocation4], 4294966912 }
 0x46c   :  { %1025 = vsyncpa [#allocation3], 1 }
 0x46d   :  { %1026 = vsyncpa [#allocation6], 1 }
 0x46e   :  { %1027 = vsyncpa [#allocation9], 1 }
 0x46f   :  { %1028 = vsyncpa [#allocation4], 1 }

</bundles_post_ra>
